<compile_context>
chip_gen: v7x
topology: tpu7x:2x2x1
jax: 0.10.0
libtpu: 0.0.40
codegen_flags: <defaults>
</compile_context>

<pallas_src>
import functools

import jax
import jax.numpy as jnp
from jax import lax
from jax.experimental import pallas as pl
from jax.experimental.pallas import tpu as pltpu


def _round_up(x, m):
    return ((x + m - 1) // m) * m


def _vmem_capacity_bytes():
    """Physical VMEM of the local chip; conservative 64 MiB fallback (v7x)."""
    try:
        info = pltpu.get_tpu_info()
        cap = getattr(info, "vmem_capacity_bytes", None)
        if cap:
            return int(cap)
    except Exception:
        pass
    return 64 * 1024 * 1024


def _default_num_row_splits():
    """2 row splits only on chips with 2 TensorCores per device."""
    try:
        kind = jax.devices()[0].device_kind.lower()
    except Exception:
        return 1
    for tag in ("v4", "v5p", "v7"):
        if tag in kind:
            return 2
    return 1


def _pick_tile_rows(n_rows, c_blk_pad, dtype_bytes, sublane):
    """Row tile sized by DMA-buffer bytes with a bounded total VMEM footprint."""
    capacity = _vmem_capacity_bytes()
    # Total live-data budget: well under physical VMEM (v7x has only 64 MiB).
    budget = min(capacity - (16 << 20), 40 << 20)
    # Per-row bytes: double-buffered logits DMA (input dtype) + ~5 f32 temps.
    per_row = c_blk_pad * (2 * dtype_bytes + 5 * 4)
    tile_by_budget = budget // max(per_row, 1)
    # Cap each logits DMA buffer at ~4 MiB; pipeline efficiency saturates there.
    tile_by_dma = (4 << 20) // max(c_blk_pad * dtype_bytes, 1)
    tile = min(int(tile_by_budget), int(tile_by_dma), 1024)
    tile = max(sublane, (tile // sublane) * sublane)
    if tile >= n_rows:
        return n_rows          # single block covering all rows (full-dim block)
    return tile


def _lsce_kernel(logits_ref, target_ref, ce_ref, nll_ref,
                 m_ref, l_ref, sumx_ref, xt_ref, acc_ce_ref, acc_nll_ref, *,
                 tile_rows, tiles_per_split, class_block, n_rows, n_classes):
    s = pl.program_id(0)          # row split (2-TC chips)
    t = pl.program_id(1)          # row tile within the split
    c = pl.program_id(2)          # class block (online LSE)

    @pl.when(jnp.logical_and(t == 0, c == 0))
    def _():
        acc_ce_ref[...] = jnp.zeros_like(acc_ce_ref)
        acc_nll_ref[...] = jnp.zeros_like(acc_nll_ref)

    @pl.when(c == 0)
    def _():
        m_ref[...] = jnp.full_like(m_ref, -jnp.inf)
        l_ref[...] = jnp.zeros_like(l_ref)
        sumx_ref[...] = jnp.zeros_like(sumx_ref)
        xt_ref[...] = jnp.zeros_like(xt_ref)

    x = logits_ref[...].astype(jnp.float32)                       # (tile, c_blk)
    tgt = target_ref[...]                                         # (tile, 1) i32

    # Column indices of this class block as a (1, c_blk) iota; compares
    # broadcast against (tile, 1) operands (no full (tile, c_blk) i32 iota).
    col = c * class_block + lax.broadcasted_iota(jnp.int32, (1, class_block), 1)
    col_valid = col < n_classes                                   # (1, c_blk)

    # Online (flash-softmax style) LSE update for this class block.
    x_m = jnp.where(col_valid, x, -jnp.inf)
    m_old = m_ref[...]
    m_new = jnp.maximum(m_old, jnp.max(x_m, axis=-1, keepdims=True))
    alpha = jnp.exp(m_old - m_new)
    l_ref[...] = alpha * l_ref[...] + jnp.sum(
        jnp.exp(x_m - m_new), axis=-1, keepdims=True)
    m_ref[...] = m_new
    sumx_ref[...] += jnp.sum(jnp.where(col_valid, x, 0.0), axis=-1, keepdims=True)
    # target[i] is always < n_classes, so padded columns never match.
    # TODO(synk): no ignore_index semantics (e.g. PyTorch's -100 targets).
    xt_ref[...] += jnp.sum(jnp.where(col == tgt, x, 0.0), axis=-1, keepdims=True)

    is_last_c = c == pl.num_programs(2) - 1

    @pl.when(is_last_c)
    def _():
        lse = m_ref[...] + jnp.log(l_ref[...])                    # (tile, 1)
        row_ce = float(n_classes) * lse - sumx_ref[...]
        row_nll = lse - xt_ref[...]
        # Mask rows beyond the batch (partial boundary row tiles).
        base = (s * tiles_per_split + t) * tile_rows
        row = base + lax.broadcasted_iota(jnp.int32, (tile_rows, 1), 0)
        valid = row < n_rows
        acc_ce_ref[...] += jnp.where(valid, row_ce, 0.0)
        acc_nll_ref[...] += jnp.where(valid, row_nll, 0.0)

    # Single cross-sublane reduction per split, only on the final grid step.
    @pl.when(jnp.logical_and(is_last_c, t == pl.num_programs(1) - 1))
    def _():
        ce_ref[...] = jnp.sum(acc_ce_ref[...], keepdims=True)
        nll_ref[...] = jnp.sum(acc_nll_ref[...], keepdims=True)


def label_smoothing_cross_entropy(logits, target, *, smoothing=0.1,
                                  reduction='mean', tile_rows=None,
                                  class_block=None, num_row_splits=None):
    """logits: (N, C) float (f32 or bf16); target: (N,) int. Returns f32 scalar."""
    n_rows, n_classes = logits.shape
    if reduction not in ('mean', 'sum'):
        # TODO(synk): reduction=None (per-row loss tensor) is not implemented.
        raise ValueError(f"unsupported reduction: {reduction!r}")

    dtype_bytes = jnp.dtype(logits.dtype).itemsize
    sublane = max(8, 32 // max(dtype_bytes, 1))   # 8 f32 / 16 bf16 / 32 int8

    # --- class blocking (online LSE) ---
    c_pad = _round_up(n_classes, 128)
    if class_block is None:
        # Tile classes only for big vocabularies; otherwise one full-width block.
        class_block = 2048 if c_pad > 16384 else n_classes
    class_block = int(class_block)
    if class_block >= n_classes:
        class_block = n_classes
        c_blk_pad = c_pad
    else:
        class_block = max(128, (class_block // 128) * 128)
        c_blk_pad = class_block
    n_c_blocks = pl.cdiv(n_classes, class_block)

    # --- row tiling ---
    if tile_rows is None:
        tile_rows = _pick_tile_rows(n_rows, c_blk_pad, dtype_bytes, sublane)
    tile_rows = int(tile_rows)
    if tile_rows < n_rows:
        tile_rows = max(sublane, (tile_rows // sublane) * sublane)
    else:
        tile_rows = n_rows
    n_row_tiles = pl.cdiv(n_rows, tile_rows)

    # --- row splits (only useful on 2-TensorCore chips) ---
    if num_row_splits is None:
        num_row_splits = _default_num_row_splits()
    n_splits = max(1, int(num_row_splits))
    if n_splits > n_row_tiles:
        n_splits = 1
    if n_splits > 1 and n_row_tiles % n_splits != 0:
        # Shrink the row tile so the tile count divides evenly (avoids a
        # duplicated, fully-masked boundary tile = wasted HBM traffic).
        want_tiles = _round_up(n_row_tiles, n_splits)
        new_tile = _round_up(pl.cdiv(n_rows, want_tiles), sublane)
        if new_tile < n_rows and pl.cdiv(n_rows, new_tile) % n_splits == 0:
            tile_rows = new_tile
            n_row_tiles = pl.cdiv(n_rows, tile_rows)
        else:
            n_splits = 1
    tiles_per_split = n_row_tiles // n_splits

    target2d = target.astype(jnp.int32).reshape(n_rows, 1)

    # Explicit VMEM budget: double-buffered logits DMA + ~5 f32 temporaries +
    # targets / per-row scratch, capped with headroom below physical capacity.
    footprint = (2 * tile_rows * c_blk_pad * dtype_bytes
                 + 5 * tile_rows * c_blk_pad * 4
                 + 8 * tile_rows * 128 * 4
                 + (8 << 20))
    vmem_limit = int(min(_vmem_capacity_bytes() - (12 << 20),
                         max(footprint, 32 << 20)))

    last_row_tile = n_row_tiles - 1

    def _row_blk(s, t):
        # With evenly-divisible tile counts the clamp never triggers; kept as
        # a safety net (its rows are masked inside the kernel anyway).
        return jnp.minimum(s * tiles_per_split + t, last_row_tile)

    kernel = functools.partial(
        _lsce_kernel,
        tile_rows=tile_rows, tiles_per_split=tiles_per_split,
        class_block=class_block, n_rows=n_rows, n_classes=n_classes)

    cost = pl.CostEstimate(
        flops=int(6 * n_rows * n_classes),
        transcendentals=int(n_rows * n_classes),
        bytes_accessed=int(n_rows * n_classes * dtype_bytes
                           + n_rows * 4 + 8 * n_splits))

    ce_parts, nll_parts = pl.pallas_call(
        kernel,
        out_shape=(jax.ShapeDtypeStruct((n_splits, 1, 1), jnp.float32),
                   jax.ShapeDtypeStruct((n_splits, 1, 1), jnp.float32)),
        grid_spec=pltpu.PrefetchScalarGridSpec(
            num_scalar_prefetch=0,
            grid=(n_splits, tiles_per_split, n_c_blocks),
            in_specs=[
                pl.BlockSpec((tile_rows, class_block),
                             lambda s, t, c: (_row_blk(s, t), c)),
                pl.BlockSpec((tile_rows, 1),
                             lambda s, t, c: (_row_blk(s, t), 0)),
            ],
            out_specs=[
                pl.BlockSpec((None, 1, 1), lambda s, t, c: (s, 0, 0)),
                pl.BlockSpec((None, 1, 1), lambda s, t, c: (s, 0, 0)),
            ],
            scratch_shapes=[pltpu.VMEM((tile_rows, 1), jnp.float32)] * 6,
        ),
        compiler_params=pltpu.CompilerParams(
            dimension_semantics=("parallel", "arbitrary", "arbitrary"),
            vmem_limit_bytes=vmem_limit),
        cost_estimate=cost,
    )(logits, target2d)

    sum_ce = jnp.sum(ce_parts)
    sum_nll = jnp.sum(nll_parts)
    if reduction == 'mean':
        sum_ce = sum_ce / n_rows
        sum_nll = sum_nll / n_rows
    return smoothing * (sum_ce / n_classes) + (1.0 - smoothing) * sum_nll


def _reference(logits, target, smoothing=0.1, reduction='mean'):
    log_preds = jax.nn.log_softmax(logits.astype(jnp.float32), axis=-1)
    row_ce = -jnp.sum(log_preds, axis=-1)
    nll_rows = -jnp.take_along_axis(
        log_preds, target[:, None].astype(jnp.int32), axis=-1)[:, 0]
    if reduction == 'mean':
        loss, nll = jnp.mean(row_ce), jnp.mean(nll_rows)
    else:
        loss, nll = jnp.sum(row_ce), jnp.sum(nll_rows)
    c = logits.shape[-1]
    return smoothing * (loss / c) + (1.0 - smoothing) * nll


if __name__ == "__main__":
    key = jax.random.PRNGKey(0)

    def check(n, c, dtype, smoothing, reduction, tol=1e-4, **kw):
        k1, k2 = jax.random.split(jax.random.fold_in(key, n * 1000 + c))
        logits = jax.random.normal(k1, (n, c), dtype=jnp.float32).astype(dtype)
        target = jax.random.randint(k2, (n,), 0, c, dtype=jnp.int32)
        out = label_smoothing_cross_entropy(
            logits, target, smoothing=smoothing, reduction=reduction, **kw)
        out = jax.block_until_ready(out)
        ref = _reference(logits, target, smoothing=smoothing, reduction=reduction)
        assert jnp.allclose(out, ref, atol=tol, rtol=tol), (n, c, dtype, out, ref)

    # basic case: single row tile, single class block, single split
    check(16, 32, jnp.float32, 0.1, 'mean')
    # bf16 logits ride the DMA in bf16; f32 math in-kernel
    check(16, 32, jnp.bfloat16, 0.1, 'mean', tol=1e-3)
    # class count not a multiple of 128 (lane padding), sum reduction
    check(24, 100, jnp.float32, 0.2, 'sum')
    # rows not divisible by tile_rows: partial boundary row tile + masking
    check(20, 100, jnp.float32, 0.1, 'mean', tile_rows=8)
    # online-LSE class tiling (partial boundary class block) + 2 even row splits
    check(32, 300, jnp.float32, 0.1, 'mean',
          tile_rows=8, class_block=128, num_row_splits=2)
    # bf16 + class tiling with a 16-row (sublane-packed) tile
    check(32, 300, jnp.bfloat16, 0.2, 'sum',
          tile_rows=16, class_block=128, tol=1e-3)

    print("KERNEL_OK")
</pallas_src>

<mosaic_0001>
module attributes {stable_mosaic.version = 11 : i64} {
  func.func @_lsce_kernel(%arg0: i32, %arg1: i32, %arg2: i32, %arg3: memref<16x32xf32, #tpu.memory_space<vmem>>, %arg4: memref<16x1xi32, #tpu.memory_space<vmem>>, %arg5: memref<1x1x1xf32, #tpu.memory_space<vmem>>, %arg6: memref<1x1x1xf32, #tpu.memory_space<vmem>>, %arg7: memref<16x1xf32, #tpu.memory_space<vmem>>, %arg8: memref<16x1xf32, #tpu.memory_space<vmem>>, %arg9: memref<16x1xf32, #tpu.memory_space<vmem>>, %arg10: memref<16x1xf32, #tpu.memory_space<vmem>>, %arg11: memref<16x1xf32, #tpu.memory_space<vmem>>, %arg12: memref<16x1xf32, #tpu.memory_space<vmem>>) attributes {dimension_semantics = [#tpu.dimension_semantics<parallel>, #tpu.dimension_semantics<arbitrary>, #tpu.dimension_semantics<arbitrary>], iteration_bounds = array<i64: 1, 1, 1>, scalar_prefetch = 0 : i64, scratch_operands = 6 : i64, tpu.core_type = #tpu.core_type<tc>, window_params = [{transform_indices = @transform_0, window_bounds = array<i64: 16, 32>}, {transform_indices = @transform_1, window_bounds = array<i64: 16, 1>}, {transform_indices = @transform_2, window_bounds = array<i64: 1, 1, 1>}, {transform_indices = @transform_3, window_bounds = array<i64: 1, 1, 1>}]} {
    %c0_i32 = arith.constant 0 : i32
    %0 = arith.cmpi eq, %arg1, %c0_i32 : i32
    %c0_i32_0 = arith.constant 0 : i32
    %1 = arith.cmpi eq, %arg2, %c0_i32_0 : i32
    %2 = arith.andi %0, %1 : i1
    %3 = arith.extui %2 : i1 to i32
    %c0_i32_1 = arith.constant 0 : i32
    %4 = arith.cmpi ne, %3, %c0_i32_1 : i32
    scf.if %4 {
      %cst_34 = arith.constant 0.000000e+00 : f32
      %62 = vector.broadcast %cst_34 : f32 to vector<16x1xf32>
      %c0_35 = arith.constant 0 : index
      %c0_36 = arith.constant 0 : index
      %63 = vector.load %arg11[%c0_35, %c0_36] : memref<16x1xf32, #tpu.memory_space<vmem>>, vector<16x1xf32>
      tpu.vector_store %arg11[%c0_35, %c0_36], %62 {strides = array<i32>} : memref<16x1xf32, #tpu.memory_space<vmem>>, vector<16x1xf32>,
      %cst_37 = arith.constant 0.000000e+00 : f32
      %64 = vector.broadcast %cst_37 : f32 to vector<16x1xf32>
      %c0_38 = arith.constant 0 : index
      %c0_39 = arith.constant 0 : index
      %65 = vector.load %arg12[%c0_38, %c0_39] : memref<16x1xf32, #tpu.memory_space<vmem>>, vector<16x1xf32>
      tpu.vector_store %arg12[%c0_38, %c0_39], %64 {strides = array<i32>} : memref<16x1xf32, #tpu.memory_space<vmem>>, vector<16x1xf32>,
    } else {
    }
    %c0_i32_2 = arith.constant 0 : i32
    %5 = arith.cmpi eq, %arg2, %c0_i32_2 : i32
    %6 = arith.extui %5 : i1 to i32
    %c0_i32_3 = arith.constant 0 : i32
    %7 = arith.cmpi ne, %6, %c0_i32_3 : i32
    scf.if %7 {
      %cst_34 = arith.constant 0xFF800000 : f32
      %62 = vector.broadcast %cst_34 : f32 to vector<16x1xf32>
      %c0_35 = arith.constant 0 : index
      %c0_36 = arith.constant 0 : index
      %63 = vector.load %arg7[%c0_35, %c0_36] : memref<16x1xf32, #tpu.memory_space<vmem>>, vector<16x1xf32>
      tpu.vector_store %arg7[%c0_35, %c0_36], %62 {strides = array<i32>} : memref<16x1xf32, #tpu.memory_space<vmem>>, vector<16x1xf32>,
      %cst_37 = arith.constant 0.000000e+00 : f32
      %64 = vector.broadcast %cst_37 : f32 to vector<16x1xf32>
      %c0_38 = arith.constant 0 : index
      %c0_39 = arith.constant 0 : index
      %65 = vector.load %arg8[%c0_38, %c0_39] : memref<16x1xf32, #tpu.memory_space<vmem>>, vector<16x1xf32>
      tpu.vector_store %arg8[%c0_38, %c0_39], %64 {strides = array<i32>} : memref<16x1xf32, #tpu.memory_space<vmem>>, vector<16x1xf32>,
      %cst_40 = arith.constant 0.000000e+00 : f32
      %66 = vector.broadcast %cst_40 : f32 to vector<16x1xf32>
      %c0_41 = arith.constant 0 : index
      %c0_42 = arith.constant 0 : index
      %67 = vector.load %arg9[%c0_41, %c0_42] : memref<16x1xf32, #tpu.memory_space<vmem>>, vector<16x1xf32>
      tpu.vector_store %arg9[%c0_41, %c0_42], %66 {strides = array<i32>} : memref<16x1xf32, #tpu.memory_space<vmem>>, vector<16x1xf32>,
      %cst_43 = arith.constant 0.000000e+00 : f32
      %68 = vector.broadcast %cst_43 : f32 to vector<16x1xf32>
      %c0_44 = arith.constant 0 : index
      %c0_45 = arith.constant 0 : index
      %69 = vector.load %arg10[%c0_44, %c0_45] : memref<16x1xf32, #tpu.memory_space<vmem>>, vector<16x1xf32>
      tpu.vector_store %arg10[%c0_44, %c0_45], %68 {strides = array<i32>} : memref<16x1xf32, #tpu.memory_space<vmem>>, vector<16x1xf32>,
    } else {
    }
    %c0 = arith.constant 0 : index
    %c0_4 = arith.constant 0 : index
    %8 = vector.load %arg3[%c0, %c0_4] : memref<16x32xf32, #tpu.memory_space<vmem>>, vector<16x32xf32>
    %c0_5 = arith.constant 0 : index
    %c0_6 = arith.constant 0 : index
    %9 = vector.load %arg4[%c0_5, %c0_6] : memref<16x1xi32, #tpu.memory_space<vmem>>, vector<16x1xi32>
    %c32_i32 = arith.constant 32 : i32
    %10 = arith.muli %arg2, %c32_i32 : i32
    %11 = tpu.iota {dimensions = array<i32: 1>} : vector<1x32xi32>
    %12 = vector.broadcast %10 : i32 to vector<1x32xi32>
    %13 = arith.addi %12, %11 : vector<1x32xi32>
    %c32_i32_7 = arith.constant 32 : i32
    %14 = vector.broadcast %c32_i32_7 : i32 to vector<1x32xi32>
    %15 = arith.cmpi slt, %13, %14 : vector<1x32xi32>
    %cst = arith.constant 0xFF800000 : f32
    %16 = vector.shape_cast %15 : vector<1x32xi1> to vector<1x32xi1>
    %17 = vector.broadcast %16 : vector<1x32xi1> to vector<16x32xi1>
    %18 = vector.broadcast %cst : f32 to vector<16x32xf32>
    %19 = arith.select %17, %8, %18 : vector<16x32xi1>, vector<16x32xf32>
    %c0_8 = arith.constant 0 : index
    %c0_9 = arith.constant 0 : index
    %20 = vector.load %arg7[%c0_8, %c0_9] : memref<16x1xf32, #tpu.memory_space<vmem>>, vector<16x1xf32>
    %cst_10 = arith.constant dense<0xFF800000> : vector<16xf32>
    %21 = vector.multi_reduction <maximumf>, %19, %cst_10 [1] : vector<16x32xf32> to vector<16xf32>
    %22 = vector.shape_cast %21 : vector<16xf32> to vector<16x1xf32>
    %23 = arith.maximumf %20, %22 : vector<16x1xf32>
    %24 = arith.subf %20, %23 : vector<16x1xf32>
    %25 = math.exp %24 : vector<16x1xf32>
    %c0_11 = arith.constant 0 : index
    %c0_12 = arith.constant 0 : index
    %26 = vector.load %arg8[%c0_11, %c0_12] : memref<16x1xf32, #tpu.memory_space<vmem>>, vector<16x1xf32>
    %27 = arith.mulf %25, %26 : vector<16x1xf32>
    %28 = vector.broadcast %23 : vector<16x1xf32> to vector<16x32xf32>
    %29 = arith.subf %19, %28 : vector<16x32xf32>
    %30 = math.exp %29 : vector<16x32xf32>
    %cst_13 = arith.constant dense<0.000000e+00> : vector<16xf32>
    %31 = vector.multi_reduction <add>, %30, %cst_13 [1] : vector<16x32xf32> to vector<16xf32>
    %32 = vector.shape_cast %31 : vector<16xf32> to vector<16x1xf32>
    %33 = arith.addf %27, %32 : vector<16x1xf32>
    %c0_14 = arith.constant 0 : index
    %c0_15 = arith.constant 0 : index
    %34 = vector.load %arg8[%c0_14, %c0_15] : memref<16x1xf32, #tpu.memory_space<vmem>>, vector<16x1xf32>
    tpu.vector_store %arg8[%c0_14, %c0_15], %33 {strides = array<i32>} : memref<16x1xf32, #tpu.memory_space<vmem>>, vector<16x1xf32>,
    %c0_16 = arith.constant 0 : index
    %c0_17 = arith.constant 0 : index
    %35 = vector.load %arg7[%c0_16, %c0_17] : memref<16x1xf32, #tpu.memory_space<vmem>>, vector<16x1xf32>
    tpu.vector_store %arg7[%c0_16, %c0_17], %23 {strides = array<i32>} : memref<16x1xf32, #tpu.memory_space<vmem>>, vector<16x1xf32>,
    %c0_18 = arith.constant 0 : index
    %c0_19 = arith.constant 0 : index
    %36 = vector.load %arg9[%c0_18, %c0_19] : memref<16x1xf32, #tpu.memory_space<vmem>>, vector<16x1xf32>
    %cst_20 = arith.constant 0.000000e+00 : f32
    %37 = vector.shape_cast %15 : vector<1x32xi1> to vector<1x32xi1>
    %38 = vector.broadcast %37 : vector<1x32xi1> to vector<16x32xi1>
    %39 = vector.broadcast %cst_20 : f32 to vector<16x32xf32>
    %40 = arith.select %38, %8, %39 : vector<16x32xi1>, vector<16x32xf32>
    %cst_21 = arith.constant dense<0.000000e+00> : vector<16xf32>
    %41 = vector.multi_reduction <add>, %40, %cst_21 [1] : vector<16x32xf32> to vector<16xf32>
    %42 = vector.shape_cast %41 : vector<16xf32> to vector<16x1xf32>
    %43 = arith.addf %36, %42 : vector<16x1xf32>
    %c0_22 = arith.constant 0 : index
    %c0_23 = arith.constant 0 : index
    %44 = vector.load %arg9[%c0_22, %c0_23] : memref<16x1xf32, #tpu.memory_space<vmem>>, vector<16x1xf32>
    tpu.vector_store %arg9[%c0_22, %c0_23], %43 {strides = array<i32>} : memref<16x1xf32, #tpu.memory_space<vmem>>, vector<16x1xf32>,
    %c0_24 = arith.constant 0 : index
    %c0_25 = arith.constant 0 : index
    %45 = vector.load %arg10[%c0_24, %c0_25] : memref<16x1xf32, #tpu.memory_space<vmem>>, vector<16x1xf32>
    %46 = vector.broadcast %13 : vector<1x32xi32> to vector<16x32xi32>
    %47 = vector.broadcast %9 : vector<16x1xi32> to vector<16x32xi32>
    %48 = arith.cmpi eq, %46, %47 : vector<16x32xi32>
    %cst_26 = arith.constant 0.000000e+00 : f32
    %49 = vector.broadcast %cst_26 : f32 to vector<16x32xf32>
    %50 = arith.select %48, %8, %49 : vector<16x32xi1>, vector<16x32xf32>
    %cst_27 = arith.constant dense<0.000000e+00> : vector<16xf32>
    %51 = vector.multi_reduction <add>, %50, %cst_27 [1] : vector<16x32xf32> to vector<16xf32>
    %52 = vector.shape_cast %51 : vector<16xf32> to vector<16x1xf32>
    %53 = arith.addf %45, %52 : vector<16x1xf32>
    %c0_28 = arith.constant 0 : index
    %c0_29 = arith.constant 0 : index
    %54 = vector.load %arg10[%c0_28, %c0_29] : memref<16x1xf32, #tpu.memory_space<vmem>>, vector<16x1xf32>
    tpu.vector_store %arg10[%c0_28, %c0_29], %53 {strides = array<i32>} : memref<16x1xf32, #tpu.memory_space<vmem>>, vector<16x1xf32>,
    %c0_i32_30 = arith.constant 0 : i32
    %55 = arith.cmpi eq, %arg2, %c0_i32_30 : i32
    %56 = arith.extui %55 : i1 to i32
    %c0_i32_31 = arith.constant 0 : i32
    %57 = arith.cmpi ne, %56, %c0_i32_31 : i32
    scf.if %57 {
      %c0_34 = arith.constant 0 : index
      %c0_35 = arith.constant 0 : index
      %62 = vector.load %arg7[%c0_34, %c0_35] : memref<16x1xf32, #tpu.memory_space<vmem>>, vector<16x1xf32>
      %c0_36 = arith.constant 0 : index
      %c0_37 = arith.constant 0 : index
      %63 = vector.load %arg8[%c0_36, %c0_37] : memref<16x1xf32, #tpu.memory_space<vmem>>, vector<16x1xf32>
      %64 = math.log %63 : vector<16x1xf32>
      %65 = arith.addf %62, %64 : vector<16x1xf32>
      %cst_38 = arith.constant 3.200000e+01 : f32
      %66 = vector.broadcast %cst_38 : f32 to vector<16x1xf32>
      %67 = arith.mulf %66, %65 : vector<16x1xf32>
      %c0_39 = arith.constant 0 : index
      %c0_40 = arith.constant 0 : index
      %68 = vector.load %arg9[%c0_39, %c0_40] : memref<16x1xf32, #tpu.memory_space<vmem>>, vector<16x1xf32>
      %69 = arith.subf %67, %68 : vector<16x1xf32>
      %c0_41 = arith.constant 0 : index
      %c0_42 = arith.constant 0 : index
      %70 = vector.load %arg10[%c0_41, %c0_42] : memref<16x1xf32, #tpu.memory_space<vmem>>, vector<16x1xf32>
      %71 = arith.subf %65, %70 : vector<16x1xf32>
      %c1_i32 = arith.constant 1 : i32
      %72 = arith.muli %arg0, %c1_i32 : i32
      %73 = arith.addi %72, %arg1 : i32
      %c16_i32 = arith.constant 16 : i32
      %74 = arith.muli %73, %c16_i32 : i32
      %75 = tpu.iota {dimensions = array<i32: 0>} : vector<16x1xi32>
      %76 = vector.broadcast %74 : i32 to vector<16x1xi32>
      %77 = arith.addi %76, %75 : vector<16x1xi32>
      %c16_i32_43 = arith.constant 16 : i32
      %78 = vector.broadcast %c16_i32_43 : i32 to vector<16x1xi32>
      %79 = arith.cmpi slt, %77, %78 : vector<16x1xi32>
      %c0_44 = arith.constant 0 : index
      %c0_45 = arith.constant 0 : index
      %80 = vector.load %arg11[%c0_44, %c0_45] : memref<16x1xf32, #tpu.memory_space<vmem>>, vector<16x1xf32>
      %cst_46 = arith.constant 0.000000e+00 : f32
      %81 = vector.broadcast %cst_46 : f32 to vector<16x1xf32>
      %82 = arith.select %79, %69, %81 : vector<16x1xi1>, vector<16x1xf32>
      %83 = arith.addf %80, %82 : vector<16x1xf32>
      %c0_47 = arith.constant 0 : index
      %c0_48 = arith.constant 0 : index
      %84 = vector.load %arg11[%c0_47, %c0_48] : memref<16x1xf32, #tpu.memory_space<vmem>>, vector<16x1xf32>
      tpu.vector_store %arg11[%c0_47, %c0_48], %83 {strides = array<i32>} : memref<16x1xf32, #tpu.memory_space<vmem>>, vector<16x1xf32>,
      %c0_49 = arith.constant 0 : index
      %c0_50 = arith.constant 0 : index
      %85 = vector.load %arg12[%c0_49, %c0_50] : memref<16x1xf32, #tpu.memory_space<vmem>>, vector<16x1xf32>
      %cst_51 = arith.constant 0.000000e+00 : f32
      %86 = vector.broadcast %cst_51 : f32 to vector<16x1xf32>
      %87 = arith.select %79, %71, %86 : vector<16x1xi1>, vector<16x1xf32>
      %88 = arith.addf %85, %87 : vector<16x1xf32>
      %c0_52 = arith.constant 0 : index
      %c0_53 = arith.constant 0 : index
      %89 = vector.load %arg12[%c0_52, %c0_53] : memref<16x1xf32, #tpu.memory_space<vmem>>, vector<16x1xf32>
      tpu.vector_store %arg12[%c0_52, %c0_53], %88 {strides = array<i32>} : memref<16x1xf32, #tpu.memory_space<vmem>>, vector<16x1xf32>,
    } else {
    }
    %c0_i32_32 = arith.constant 0 : i32
    %58 = arith.cmpi eq, %arg1, %c0_i32_32 : i32
    %59 = arith.andi %55, %58 : i1
    %60 = arith.extui %59 : i1 to i32
    %c0_i32_33 = arith.constant 0 : i32
    %61 = arith.cmpi ne, %60, %c0_i32_33 : i32
    scf.if %61 {
      %c0_34 = arith.constant 0 : index
      %c0_35 = arith.constant 0 : index
      %62 = vector.load %arg11[%c0_34, %c0_35] : memref<16x1xf32, #tpu.memory_space<vmem>>, vector<16x1xf32>
      %63 = vector.shape_cast %62 : vector<16x1xf32> to vector<1x16x1xf32>
      %cst_36 = arith.constant dense<0.000000e+00> : vector<1xf32>
      %64 = vector.multi_reduction <add>, %63, %cst_36 [1, 2] : vector<1x16x1xf32> to vector<1xf32>
      %65 = vector.shape_cast %64 : vector<1xf32> to vector<1x1x1xf32>
      %66 = vector.extract %65[0, 0, 0] : f32 from vector<1x1x1xf32>
      %67 = vector.broadcast %66 : f32 to vector<1x1xf32>
      %c0_37 = arith.constant 0 : index
      %c0_38 = arith.constant 0 : index
      %c0_39 = arith.constant 0 : index
      %68 = vector.load %arg5[%c0_37, %c0_38, %c0_39] : memref<1x1x1xf32, #tpu.memory_space<vmem>>, vector<1x1x1xf32>
      %69 = vector.shape_cast %68 : vector<1x1x1xf32> to vector<1x1xf32>
      %70 = vector.shape_cast %67 : vector<1x1xf32> to vector<1x1x1xf32>
      tpu.vector_store %arg5[%c0_37, %c0_38, %c0_39], %70 {strides = array<i32>} : memref<1x1x1xf32, #tpu.memory_space<vmem>>, vector<1x1x1xf32>,
      %c0_40 = arith.constant 0 : index
      %c0_41 = arith.constant 0 : index
      %71 = vector.load %arg12[%c0_40, %c0_41] : memref<16x1xf32, #tpu.memory_space<vmem>>, vector<16x1xf32>
      %72 = vector.shape_cast %71 : vector<16x1xf32> to vector<1x16x1xf32>
      %cst_42 = arith.constant dense<0.000000e+00> : vector<1xf32>
      %73 = vector.multi_reduction <add>, %72, %cst_42 [1, 2] : vector<1x16x1xf32> to vector<1xf32>
      %74 = vector.shape_cast %73 : vector<1xf32> to vector<1x1x1xf32>
      %75 = vector.extract %74[0, 0, 0] : f32 from vector<1x1x1xf32>
      %76 = vector.broadcast %75 : f32 to vector<1x1xf32>
      %c0_43 = arith.constant 0 : index
      %c0_44 = arith.constant 0 : index
      %c0_45 = arith.constant 0 : index
      %77 = vector.load %arg6[%c0_43, %c0_44, %c0_45] : memref<1x1x1xf32, #tpu.memory_space<vmem>>, vector<1x1x1xf32>
      %78 = vector.shape_cast %77 : vector<1x1x1xf32> to vector<1x1xf32>
      %79 = vector.shape_cast %76 : vector<1x1xf32> to vector<1x1x1xf32>
      tpu.vector_store %arg6[%c0_43, %c0_44, %c0_45], %79 {strides = array<i32>} : memref<1x1x1xf32, #tpu.memory_space<vmem>>, vector<1x1x1xf32>,
    } else {
    }
    return
  }
  func.func @transform_0(%arg0: i32, %arg1: i32, %arg2: i32) -> (i32, i32) {
    %c1_i32 = arith.constant 1 : i32
    %0 = arith.muli %arg0, %c1_i32 : i32
    %1 = arith.addi %0, %arg1 : i32
    %c0_i32 = arith.constant 0 : i32
    %2 = arith.minsi %1, %c0_i32 : i32
    %c0_i32_0 = arith.constant 0 : i32
    return %2, %arg2 : i32, i32
  }
  func.func @transform_1(%arg0: i32, %arg1: i32, %arg2: i32) -> (i32, i32) {
    %c1_i32 = arith.constant 1 : i32
    %0 = arith.muli %arg0, %c1_i32 : i32
    %1 = arith.addi %0, %arg1 : i32
    %c0_i32 = arith.constant 0 : i32
    %2 = arith.minsi %1, %c0_i32 : i32
    %c0_i32_0 = arith.constant 0 : i32
    %c0_i32_1 = arith.constant 0 : i32
    return %2, %c0_i32_0 : i32, i32
  }
  func.func @transform_2(%arg0: i32, %arg1: i32, %arg2: i32) -> (i32, i32, i32) {
    %c0_i32 = arith.constant 0 : i32
    %c0_i32_0 = arith.constant 0 : i32
    %c0_i32_1 = arith.constant 0 : i32
    return %arg0, %c0_i32, %c0_i32_0 : i32, i32, i32
  }
  func.func @transform_3(%arg0: i32, %arg1: i32, %arg2: i32) -> (i32, i32, i32) {
    %c0_i32 = arith.constant 0 : i32
    %c0_i32_0 = arith.constant 0 : i32
    %c0_i32_1 = arith.constant 0 : i32
    return %arg0, %c0_i32, %c0_i32_0 : i32, i32, i32
  }
}

</mosaic_0001>

<bundles_post_ra>
// kernel: tpu_custom_call.1
= control target key start
LH: loop header
LB: loop body
LE: loop exit
PB: predicated region body
PF: predicated region fallthrough
CT: control target
= control target key end

     0   :  { %9 = vsyncpa [#allocation9], 0  ;;  %v107_v0 = vlaneseq  ;;  %s519_s0 = inlined_call_operand.vmem [shape: f32[16,32], index: 0, kind: input, shape index: {}]   ;;  %s520_s1 = inlined_call_operand.vmem [shape: s32[16,1], index: 1, kind: input, shape index: {}]   ;;  %s521_s2 = inlined_call_operand.hbm [shape: f32[1,1,1], index: 2, kind: output, shape index: {0}]   ;;  %s522_s3 = inlined_call_operand.hbm [shape: f32[1,1,1], index: 3, kind: output, shape index: {1}]  }
   0x1   :  { %10 = vsyncpa [#allocation11], 0  ;;  %v425_v1 = vld [vmem:[%s519_s0] sm:$0xff]  ;;  %v432_v3 = vld [vmem:[%s519_s0 + $0x8] sm:$0xff]  ;;  %vm118_vm0 = vcmask 261120   ;;  %vm85_vm2 = vcmask 7168  }
   0x2   :  { %v427_v2 = vand.u32 127, %v107_v0  ;;  %v397_v8 = vmov -inf   ;;  %v398_v9 = vmov 0   ;;  %v399_v10 = vmov 0.0   ;;  %v104_v11 = vld [vmem:[%s520_s1] sm:$0xff]  ;;  %v105_v20 = vld [vmem:[%s520_s1 + $0x8] sm:$0xff] }
   0x3   :  { %94 = vst.msk [vmem:[#allocation2] sm:$0xff] %vm85_vm2, %v397_v8  ;;  %95 = vst.msk [vmem:[#allocation2 + $0x8] sm:$0xff] %vm85_vm2, %v397_v8  ;;  %335 = vset.pattern.permute.xlu1 %v398_v9  ;;  %336 = vset.pattern.permute.xlu0 %v398_v9  ;;  %s400_s1 = smov [#allocation8]   ;;  %vm268_vm5 = vcmask 0   ;;  %s401_s21 = smov [#allocation10]  }
   0x4   :  { %vm111_vm1 = vcmp.lt.s32.totalorder %v427_v2, 32  ;;  %96 = vst.msk [vmem:[#allocation3] sm:$0xff] %vm85_vm2, %v399_v10  ;;  %86 = vst.msk [vmem:[#allocation6] sm:$0xff] %vm85_vm2, %v399_v10  ;;  %s292_s19 = sshll.u32 %s400_s1, 4  ;;  %s302_s22 = sshll.u32 %s401_s21, 4  ;;  %s293_s19 = int_to_ptr.vmem [resolvable:$true] %s292_s19  ;;  %s303_s22 = int_to_ptr.vmem [resolvable:$true] %s302_s22 }
   0x5   :  { %v114_v4 = vsel %vm111_vm1, %v425_v1, -inf  ;;  %v115_v5 = vsel %vm111_vm1, %v432_v3, -inf  ;;  %87 = vst.msk [vmem:[#allocation6 + $0x8] sm:$0xff] %vm85_vm2, %v399_v10  ;;  %88 = vst.msk [vmem:[#allocation7] sm:$0xff] %vm85_vm2, %v399_v10  ;;  %v168_v21 = vsel %vm111_vm1, %v425_v1, 0.0  ;;  %v169_v33 = vsel %vm111_vm1, %v432_v3, 0.0  ;;  %p354_p1 = scmp.lt.s32.totalorder %s293_s19, %s293_s19 }
   0x6   :  { %v119_v6 = vsel %vm118_vm0, %v114_v4, -inf  ;;  %v122_v7 = vsel %vm118_vm0, %v115_v5, -inf  ;;  %89 = vst.msk [vmem:[#allocation7 + $0x8] sm:$0xff] %vm85_vm2, %v399_v10  ;;  %97 = vst.msk [vmem:[#allocation3 + $0x8] sm:$0xff] %vm85_vm2, %v399_v10  ;;  %v170_v22 = vsel %vm118_vm0, %v168_v21, 0.0  ;;  %v173_v35 = vsel %vm118_vm0, %v169_v33, 0.0 }
   0x7   :  { %120 = vmax.xlane.f32.xlu0 %v119_v6  ;;  %98 = vst.msk [vmem:[#allocation4] sm:$0xff] %vm85_vm2, %v399_v10  ;;  %99 = vst.msk [vmem:[#allocation4 + $0x8] sm:$0xff] %vm85_vm2, %v399_v10  ;;  %s349_s23 = scalar_lea.vmem %s293_s19, 16  ;;  %s353_s24 = scalar_lea.vmem %s293_s19, 32 }
   0x8   :  { %100 = vst.msk [vmem:[#allocation5] sm:$0xff] %vm85_vm2, %v399_v10  ;;  %101 = vst.msk [vmem:[#allocation5 + $0x8] sm:$0xff] %vm85_vm2, %v399_v10  ;;  %p350_p0 = scmp.ne.s32.totalorder %s293_s19, %s349_s23  ;;  %p355_p2 = scmp.lt.s32.totalorder %s353_s24, %s349_s23 }
   0xa   :  { %v116_v12 = vld [vmem:[#allocation2] sm:$0xff]  ;;  %v117_v15 = vld [vmem:[#allocation2 + $0x8] sm:$0xff]  ;;  %p356_p3 = por %p355_p2, %p354_p1 }
   0xb   :  { %123 = vmax.xlane.f32.xlu0 %v122_v7  ;;  %v133_v47 = vld [vmem:[#allocation3] sm:$0xff] }
   0xc   :  { %v243_v10 = vld [vmem:[#allocation7] sm:$0xff]  ;;  %p357_p4 = pnand %p356_p3, %p350_p0 }
   0xd   :  { %v134_v51 = vld [vmem:[#allocation3 + $0x8] sm:$0xff] }
   0xe   :  { %v166_v42 = vld [vmem:[#allocation4] sm:$0xff]  ;;  %v167_v56 = vld [vmem:[#allocation4 + $0x8] sm:$0xff] }
   0xf   :  { %v180_v60 = vld [vmem:[#allocation5] sm:$0xff]  ;;  %v181_v0 = vld [vmem:[#allocation5 + $0x8] sm:$0xff] }
  0x21   :  { %183 = vperm.xlu0 %336, %v104_v11  }
  0x40   :  { %171 = vadd.xlane.f32.xlu0 %v170_v22 }
  0x94   :  { %v121_v13 = vpop.xlane.xlu0 %120 }
  0x95   :  { %v125_v14 = vmax.f32 %v116_v12, %v121_v13 }
  0x97   :  { %v127_v16 = vsub.f32 %v116_v12, %v125_v14  ;;  %164 = vst.msk [vmem:[#allocation2] sm:$0xff] %vm85_vm2, %v125_v14  ;;  %139 = vperm.xlu1 %335, %v125_v14  }
  0x98   :  { %v124_v17 = vpop.xlane.xlu0 %123 }
  0x99   :  { %v126_v18 = vmax.f32 %v117_v15, %v124_v17  ;;  %v129_v44 = vmul.f32 1.442695, %v127_v16 }
  0x9b   :  { %v128_v19 = vsub.f32 %v117_v15, %v126_v18  ;;  %165 = vst.msk [vmem:[#allocation2 + $0x8] sm:$0xff] %vm85_vm2, %v126_v18  ;;  %144 = vperm.xlu1 %335, %v126_v18   ;;  %v235_v15 = vld [vmem:[#allocation6] sm:$0xff] }
  0x9d   :  { %v131_v45 = vmul.f32 1.442695, %v128_v19 }
  0x9f   :  { %186 = vperm.xlu1 %335, %v105_v20   ;;  %v244_v20 = vld [vmem:[#allocation7 + $0x8] sm:$0xff] }
  0xa0   :  { %v184_v31 = vpop.permute.xlu0 %183 }
  0xa1   :  { %vm188_vm3 = vcmp.eq.s32.totalorder %v427_v2, %v184_v31 }
  0xa2   :  { %v190_v37 = vsel %vm188_vm3, %v425_v1, 0.0  ;;  %v206_v14 = vld [vmem:[#allocation2 + $0x8] sm:$0xff] }
  0xa3   :  { %v192_v38 = vsel %vm118_vm0, %v190_v37, 0.0 }
  0xcd   :  { %v172_v41 = vpop.xlane.xlu0 %171 }
  0xce   :  { %v176_v43 = vadd.f32 %v172_v41, %v166_v42 }
  0xd0   :  { %178 = vst.msk [vmem:[#allocation4] sm:$0xff] %vm85_vm2, %v176_v43 }
  0xd7   :  { %v217_v9 = vld [vmem:[#allocation4] sm:$0xff] }
 0x116   :  { %v140_v23 = vpop.permute.xlu1 %139 }
 0x117   :  { %v147_v24 = vsub.f32 %v114_v4, %v140_v23 }
 0x119   :  { %v149_v25 = vmul.f32 1.442695, %v147_v24 }
 0x11a   :  { %v145_v26 = vpop.permute.xlu1 %144 }
 0x11b   :  { %337 = vpow2.f32 %v149_v25  ;;  %v148_v27 = vsub.f32 %v115_v5, %v145_v26  ;;  %v205_v5 = vld [vmem:[#allocation2] sm:$0xff]  ;;  %v236_v25 = vld [vmem:[#allocation6 + $0x8] sm:$0xff] }
 0x11d   :  { %v151_v28 = vmul.f32 1.442695, %v148_v27 }
 0x11e   :  { %v187_v36 = vpop.permute.xlu1 %186 }
 0x11f   :  { %339 = vpow2.f32 %v151_v28  ;;  %vm189_vm4 = vcmp.eq.s32.totalorder %v427_v2, %v187_v36 }
 0x120   :  { %v191_v39 = vsel %vm189_vm4, %v432_v3, 0.0  ;;  %341 = vpow2.f32 %v129_v44 }
 0x121   :  { %v195_v40 = vsel %vm118_vm0, %v191_v39, 0.0  ;;  %343 = vpow2.f32 %v131_v45 }
 0x125   :  { %v338_v29 = vpop.eup %337 }
 0x126   :  { %v153_v30 = vsel %vm118_vm0, %v338_v29, 0.0 }
 0x127   :  { %154 = vadd.xlane.f32.xlu1 %v153_v30 }
 0x129   :  { %v340_v32 = vpop.eup %339 }
 0x12a   :  { %v156_v34 = vsel %vm118_vm0, %v340_v32, 0.0  ;;  %v342_v46 = vpop.eup %341 }
 0x12b   :  { %157 = vadd.xlane.f32.xlu1 %v156_v34  ;;  %v135_v48 = vmul.f32 %v342_v46, %v133_v47  ;;  %v344_v49 = vpop.eup %343 }
 0x12c   :  { %v136_v53 = vmul.f32 %v344_v49, %v134_v51 }
 0x12f   :  { %174 = vadd.xlane.f32.xlu1 %v173_v35 }
 0x133   :  { %193 = vadd.xlane.f32.xlu1 %v192_v38 }
 0x137   :  { %196 = vadd.xlane.f32.xlu1 %v195_v40 }
 0x1b4   :  { %v155_v50 = vpop.xlane.xlu1 %154 }
 0x1b5   :  { %v159_v52 = vadd.f32 %v155_v50, %v135_v48 }
 0x1b7   :  { %162 = vst.msk [vmem:[#allocation3] sm:$0xff] %vm85_vm2, %v159_v52 }
 0x1b8   :  { %v158_v54 = vpop.xlane.xlu1 %157 }
 0x1b9   :  { %v160_v55 = vadd.f32 %v158_v54, %v136_v53 }
 0x1bb   :  { %163 = vst.msk [vmem:[#allocation3 + $0x8] sm:$0xff] %vm85_vm2, %v160_v55 }
 0x1bc   :  { %v175_v57 = vpop.xlane.xlu1 %174 }
 0x1bd   :  { %v177_v58 = vadd.f32 %v175_v57, %v167_v56 }
 0x1be   :  { %v207_v59 = vld [vmem:[#allocation3] sm:$0xff] }
 0x1bf   :  { %345 = vlog2.f32 %v207_v59  ;;  %179 = vst.msk [vmem:[#allocation4 + $0x8] sm:$0xff] %vm85_vm2, %v177_v58 }
 0x1c0   :  { %v194_v61 = vpop.xlane.xlu1 %193 }
 0x1c1   :  { %v198_v62 = vadd.f32 %v194_v61, %v180_v60 }
 0x1c2   :  { %v208_v63 = vld [vmem:[#allocation3 + $0x8] sm:$0xff] }
 0x1c3   :  { %347 = vlog2.f32 %v208_v63  ;;  %200 = vst.msk [vmem:[#allocation5] sm:$0xff] %vm85_vm2, %v198_v62 }
 0x1c4   :  { %v197_v1 = vpop.xlane.xlu1 %196 }
 0x1c5   :  { %v199_v2 = vadd.f32 %v197_v1, %v181_v0 }
 0x1c6   :  { %v218_v24 = vld [vmem:[#allocation4 + $0x8] sm:$0xff] }
 0x1c7   :  { %201 = vst.msk [vmem:[#allocation5 + $0x8] sm:$0xff] %vm85_vm2, %v199_v2 }
 0x1c9   :  { %v346_v3 = vpop.eup %345 }
 0x1ca   :  { %v210_v4 = vmul.f32 0.6931472, %v346_v3  ;;  %v221_v6 = vld [vmem:[#allocation5] sm:$0xff] }
 0x1cc   :  { %v213_v7 = vadd.f32 %v210_v4, %v205_v5 }
 0x1cd   :  { %v348_v8 = vpop.eup %347 }
 0x1ce   :  { %v212_v11 = vmul.f32 0.6931472, %v348_v8  ;;  %v223_v12 = vsub.f32 %v213_v7, %v221_v6  ;;  %v215_v13 = vmul.f32 32.0, %v213_v7  ;;  %v222_v19 = vld [vmem:[#allocation5 + $0x8] sm:$0xff] }
 0x1d0   :  { %v214_v16 = vadd.f32 %v212_v11, %v206_v14  ;;  %v219_v17 = vsub.f32 %v215_v13, %v217_v9  ;;  %v247_v18 = vadd.f32 %v243_v10, %v223_v12 }
 0x1d2   :  { %v216_v21 = vmul.f32 32.0, %v214_v16  ;;  %v224_v22 = vsub.f32 %v214_v16, %v222_v19  ;;  %v239_v23 = vadd.f32 %v235_v15, %v219_v17  ;;  %249 = vst.msk [vmem:[#allocation7] sm:$0xff] %vm85_vm2, %v247_v18 }
 0x1d4   :  { %v220_v26 = vsub.f32 %v216_v21, %v218_v24  ;;  %241 = vst.msk [vmem:[#allocation6] sm:$0xff] %vm85_vm2, %v239_v23  ;;  %v248_v27 = vadd.f32 %v244_v20, %v224_v22 }
 0x1d6   :  { %v240_v28 = vadd.f32 %v236_v25, %v220_v26  ;;  %250 = vst.msk [vmem:[#allocation7 + $0x8] sm:$0xff] %vm85_vm2, %v248_v27 }
 0x1d8   :  { %242 = vst.msk [vmem:[#allocation6 + $0x8] sm:$0xff] %vm85_vm2, %v240_v28 }
 0x1d9   :  { %v270_v35 = vld [vmem:[#allocation7] sm:$0xff] }
 0x1da   :  { %v272_v37 = vsel %vm85_vm2, %v270_v35, 0.0 }
 0x1db   :  { %v253_v29 = vld [vmem:[#allocation6] sm:$0xff] }
 0x1dc   :  { %v255_v32 = vsel %vm85_vm2, %v253_v29, 0.0 }
 0x1dd   :  { %v271_v31 = vld [vmem:[#allocation7 + $0x8] sm:$0xff] }
 0x1de   :  { %v273_v36 = vsel %vm85_vm2, %v271_v31, 0.0 }
 0x1df   :  { %v254_v30 = vld [vmem:[#allocation6 + $0x8] sm:$0xff]  ;;  %v274_v38 = vadd.f32 %v273_v36, %v272_v37 }
 0x1e0   :  { %v256_v33 = vsel %vm85_vm2, %v254_v30, 0.0 }
 0x1e1   :  { %v257_v34 = vadd.f32 %v256_v33, %v255_v32 }
 0x1e3   :  { %258 = vadd.xlane.f32.xlu1 %v257_v34 }
 0x1e7   :  { %275 = vadd.xlane.f32.xlu1 %v274_v38 }
 0x270   :  { %v259_v39 = vpop.xlane.xlu1 %258 }
 0x271   :  { %v260_v40 = vrot.slane %v259_v39, 4 }
 0x273   :  { %v261_v41 = vadd.f32 %v260_v40, %v259_v39 }
 0x274   :  { %v276_v42 = vpop.xlane.xlu1 %275 }
 0x275   :  { %v262_v43 = vrot.slane %v261_v41, 2  ;;  %v277_v44 = vrot.slane %v276_v42, 4 }
 0x277   :  { %v278_v45 = vadd.f32 %v277_v44, %v276_v42  ;;  %v263_v46 = vadd.f32 %v262_v43, %v261_v41 }
 0x279   :  { %v279_v47 = vrot.slane %v278_v45, 2  ;;  %v264_v48 = vrot.slane %v263_v46, 1 }
 0x27b   :  { %v280_v49 = vadd.f32 %v279_v47, %v278_v45  ;;  %v265_v50 = vadd.f32 %v264_v48, %v263_v46 }
 0x27d   :  { %326 = vpush %v265_v50  ;;  %v281_v51 = vrot.slane %v280_v49, 1 }
 0x27f   :  { %v282_v52 = vadd.f32 %v281_v51, %v280_v49 }
 0x281   :  { %328 = vpush %v282_v52 }
 0x2ae   :  { %s327_s20 = spop %326 }
 0x2af   :  { %v267_v53 = vstv %s327_s20 }
 0x2b0   :  { %269 = vst.msk [vmem:[#allocation8] sm:$0x1] %vm268_vm5, %v267_v53 }
 0x2b1   :  { %360 = shalt.err (!%p357_p4)
}
 0x2b2   :  { %s361_s27 = scalar_lea.hbm %s521_s2, 16 }
 0x2b3   :  { %p362_p5 = scmp.ne.s32.totalorder %s521_s2, %s361_s27  ;;  %p365_p6 = scmp.lt.u32.totalorder %s361_s27, %s521_s2 }
 0x2b5   :  { %p367_p7 = pnand %p365_p6, %p362_p5 }
 0x2b7   :  { %370 = shalt.err (!%p367_p7)
}
 0x2b8   :  { %295 = dma.vmem_to_hbm [thread:$0]  %s293_s19, 16, %s521_s2, [#allocation9]  }
 0x2b9   :  { %s329_s7 = spop %328  ;;  %s371_s8 = scalar_lea.vmem %s303_s22, 16 }
 0x2ba   :  { %v284_v54 = vstv %s329_s7  ;;  %p372_p8 = scmp.ne.s32.totalorder %s303_s22, %s371_s8  ;;  %s375_s9 = scalar_lea.vmem %s303_s22, 32 }
 0x2bb   :  { %285 = vst.msk [vmem:[#allocation10] sm:$0x1] %vm268_vm5, %v284_v54  ;;  %p376_p9 = scmp.lt.s32.totalorder %s303_s22, %s303_s22  ;;  %p377_p10 = scmp.lt.s32.totalorder %s375_s9, %s371_s8 }
 0x2bd   :  { %p378_p11 = por %p377_p10, %p376_p9 }
 0x2bf   :  { %p379_p12 = pnand %p378_p11, %p372_p8 }
 0x2c1   :  { %382 = shalt.err (!%p379_p12)
}
 0x2c2   :  { %s383_s12 = scalar_lea.hbm %s522_s3, 16 }
 0x2c3   :  { %p384_p13 = scmp.ne.s32.totalorder %s522_s3, %s383_s12  ;;  %p387_p0 = scmp.lt.u32.totalorder %s383_s12, %s522_s3 }
 0x2c5   :  { %p389_p1 = pnand %p387_p0, %p384_p13 }
 0x2c7   :  { %392 = shalt.err (!%p389_p1)
}
 0x2c8   :  { %305 = dma.vmem_to_hbm [thread:$0]  %s303_s22, 16, %s522_s3, [#allocation11]  }
 0x2c9   :  { %393 = dma.done.wait [#allocation9], 16  }
 0x2ca   :  { %394 = vsyncadd [#allocation9], 4294967280 }
 0x2cb   :  { %395 = dma.done.wait [#allocation11], 16  }
 0x2cc   :  { %396 = vsyncadd [#allocation11], 4294967280 }
 0x2cd   :  { %312 = vsyncpa [#allocation9], 1 }
 0x2ce   :  { %313 = vsyncpa [#allocation11], 1 }

</bundles_post_ra>
